<compile_context>
chip_gen: v6e
topology: v6e:2x2x1
jax: 0.10.0
libtpu: 0.0.40
codegen_flags: <defaults>
</compile_context>

<pallas_src>
import functools

import jax
import jax.numpy as jnp
from jax.experimental import pallas as pl
from jax.experimental.pallas import tpu as pltpu


def _round_up(x: int, m: int) -> int:
    return (x + m - 1) // m * m


# -----------------------------------------------------------------------------
# Kernels
# -----------------------------------------------------------------------------
def _decoder_kernel_fused(x_ref, w_ref, b_ref, o_ref):
    """2-D grid: whole latent (K) dim resident in VMEM -> single MXU dot."""
    acc = jnp.dot(x_ref[...], w_ref[...], preferred_element_type=jnp.float32)
    o_ref[...] = jnp.tanh(acc + b_ref[...])


def _decoder_kernel_ktiled(x_ref, w_ref, b_ref, o_ref):
    """3-D grid (M, N, K): accumulate directly into the resident f32 output."""
    k = pl.program_id(2)

    @pl.when(k == 0)
    def _():
        o_ref[...] = jnp.zeros_like(o_ref)

    o_ref[...] += jnp.dot(x_ref[...], w_ref[...],
                          preferred_element_type=jnp.float32)

    @pl.when(k == pl.num_programs(2) - 1)
    def _():
        o_ref[...] = jnp.tanh(o_ref[...] + b_ref[...])


# -----------------------------------------------------------------------------
# Parameter prep (runs ONCE at init time, not per forward call)
# -----------------------------------------------------------------------------
def prepare_decoder_params(weight, bias, *, compute_dtype=jnp.bfloat16):
    """weight: (output_dim, latent_dim) nn.Linear layout; bias: (output_dim,).

    Returns (w_t_pad, b_pad, output_dim): weight transposed to
    (latent_pad, output_pad), zero-padded to 128-multiples, stored in
    `compute_dtype` (bf16 by default -> half the HBM weight stream, native
    MXU feed); bias as a (1, output_pad) f32 row.
    """
    D, L = weight.shape
    l_pad = _round_up(L, 128)
    d_pad = _round_up(D, 128)
    w_t = jnp.asarray(weight, jnp.float32).T                       # (L, D)
    w_t_pad = jnp.pad(w_t, ((0, l_pad - L), (0, d_pad - D))).astype(compute_dtype)
    b_pad = jnp.pad(jnp.asarray(bias, jnp.float32),
                    (0, d_pad - D)).reshape(1, d_pad)
    return w_t_pad, b_pad, D


# -----------------------------------------------------------------------------
# Forward
# -----------------------------------------------------------------------------
def decoder_forward(x, w_t_pad, b_pad, out_dim, *,
                    max_working_set_bytes=20 * 2**20):
    """x: (B, latent_dim) any float dtype. Returns tanh(x @ W^T + b), float32."""
    # The MXU feed dtype is derived from the prepared weight (single source of
    # truth) so prep/forward can never silently disagree.
    compute_dtype = w_t_pad.dtype
    x = jnp.asarray(x)
    B, L = x.shape
    l_pad, d_pad = w_t_pad.shape
    itemsize = jnp.dtype(compute_dtype).itemsize

    # ---- tile selection ----------------------------------------------------
    if B <= 128:
        tm = _round_up(B, 8)
    else:
        # pick from {256, 128}: minimize padded-row waste, prefer larger tile
        tm = min((256, 128), key=lambda t: (_round_up(B, t) - B, -t))
    b_padded = _round_up(B, tm)

    def footprint(tm_, tn_, tk_):
        # double-buffered x & W tiles + bias + double-buffered f32 output tile
        return 2 * ((tm_ * tk_ + tk_ * tn_) * itemsize
                    + tn_ * 4 + tm_ * tn_ * 4)

    tn = tk = None
    # Prefer collapsing K entirely (single dot per output tile, no K axis).
    for tn_c in (512, 256, 128):
        if d_pad % tn_c == 0 and footprint(tm, tn_c, l_pad) <= max_working_set_bytes:
            tn, tk = tn_c, l_pad
            break
    if tn is None:
        # K-tiled fallback: lane-dense (large tn) first, then largest tk.
        for tn_c in (512, 256, 128):
            if d_pad % tn_c:
                continue
            for tk_c in (1024, 512, 256, 128):
                if l_pad % tk_c:
                    continue
                if footprint(tm, tn_c, tk_c) <= max_working_set_bytes:
                    tn, tk = tn_c, tk_c
                    break
            if tn is not None:
                break
    if tn is None:
        tn, tk = 128, 128                        # minimal tiles always fit

    # v7x megacore: guarantee >= 2 output blocks when the output dim allows it.
    gm, gn = b_padded // tm, d_pad // tn
    if gm * gn < 2 and d_pad >= 256:
        tn = d_pad // 2 if (d_pad // 2) % 128 == 0 else 128
        gn = d_pad // tn
    gk = l_pad // tk

    # ---- input prep: cast / pad only when actually needed --------------------
    x_p = x if x.dtype == compute_dtype else x.astype(compute_dtype)
    if b_padded != B or l_pad != L:
        # K-tail MUST be zero (garbage * padded-zero weight rows would NaN valid
        # rows); padded M rows are sliced off below.
        x_p = jnp.pad(x_p, ((0, b_padded - B), (0, l_pad - L)))

    cost = pl.CostEstimate(
        flops=2 * b_padded * l_pad * d_pad,
        transcendentals=b_padded * d_pad,
        bytes_accessed=(b_padded * l_pad * itemsize + l_pad * d_pad * itemsize
                        + d_pad * 4 + b_padded * d_pad * 4),
    )
    vmem_limit = int(min(48 * 2**20,
                         max(32 * 2**20, footprint(tm, tn, tk) + 8 * 2**20)))

    if gk == 1:
        grid = (gm, gn)
        in_specs = [
            pl.BlockSpec((tm, l_pad), lambda i, j: (i, 0)),   # x tile (full K)
            pl.BlockSpec((l_pad, tn), lambda i, j: (0, j)),   # W^T tile (full K)
            pl.BlockSpec((1, tn), lambda i, j: (0, j)),       # bias tile
        ]
        out_spec = pl.BlockSpec((tm, tn), lambda i, j: (i, j))
        kernel = _decoder_kernel_fused
        semantics = ("parallel", "parallel")
    else:
        grid = (gm, gn, gk)
        # Small-batch decode is DMA-latency bound: triple-buffer the streams.
        buffered = tm < 128 and gk > 1
        if buffered:
            x_spec = pl.BlockSpec((tm, tk), lambda i, j, k: (i, k),
                                  pipeline_mode=pl.Buffered(3))
            w_spec = pl.BlockSpec((tk, tn), lambda i, j, k: (k, j),
                                  pipeline_mode=pl.Buffered(3))
        else:
            x_spec = pl.BlockSpec((tm, tk), lambda i, j, k: (i, k))
            w_spec = pl.BlockSpec((tk, tn), lambda i, j, k: (k, j))
        in_specs = [x_spec, w_spec,
                    pl.BlockSpec((1, tn), lambda i, j, k: (0, j))]
        out_spec = pl.BlockSpec((tm, tn), lambda i, j, k: (i, j))
        kernel = _decoder_kernel_ktiled
        semantics = ("parallel", "parallel", "arbitrary")

    out_pad = pl.pallas_call(
        kernel,
        out_shape=jax.ShapeDtypeStruct((b_padded, d_pad), jnp.float32),
        grid_spec=pltpu.PrefetchScalarGridSpec(
            num_scalar_prefetch=0,
            grid=grid,
            in_specs=in_specs,
            out_specs=out_spec,
        ),
        compiler_params=pltpu.CompilerParams(
            dimension_semantics=semantics,
            vmem_limit_bytes=vmem_limit),
        cost_estimate=cost,
    )(x_p, w_t_pad, b_pad)

    if b_padded == B and d_pad == out_dim:
        return out_pad
    return out_pad[:B, :out_dim]


if __name__ == "__main__":
    batch, latent_dim, output_dim = 8, 32, 64

    key = jax.random.PRNGKey(0)
    kx, kw, kb, kx2, kw2, kb2 = jax.random.split(key, 6)

    # PyTorch Linear-style uniform init.
    bound = 1.0 / (latent_dim ** 0.5)
    weight = jax.random.uniform(kw, (output_dim, latent_dim),
                                jnp.float32, -bound, bound)
    bias = jax.random.uniform(kb, (output_dim,), jnp.float32, -bound, bound)
    x = jax.random.normal(kx, (batch, latent_dim), jnp.float32)

    ref = jnp.tanh(x @ weight.T + bias)

    # --- default path: bf16 MXU feed, f32 accumulation / bias / tanh --------
    w_bf16, b_f32, d_out = prepare_decoder_params(weight, bias)
    fwd = jax.jit(functools.partial(decoder_forward, out_dim=d_out))
    out_bf16 = fwd(x, w_bf16, b_f32)
    jax.block_until_ready(out_bf16)
    assert out_bf16.shape == (batch, output_dim)
    assert out_bf16.dtype == jnp.float32
    assert jnp.allclose(out_bf16, ref, atol=2e-2, rtol=2e-2)

    # --- opt-out f32 path: matches torch `x.to(torch.float)` semantics ------
    w_f32, b_f32b, _ = prepare_decoder_params(weight, bias,
                                              compute_dtype=jnp.float32)
    out_f32 = jax.jit(functools.partial(decoder_forward, out_dim=d_out))(
        x, w_f32, b_f32b)
    jax.block_until_ready(out_f32)
    assert jnp.allclose(out_f32, ref, atol=1e-5, rtol=1e-5)

    # --- K-tiled fallback path (accumulate-into-output + buffered streams) --
    latent2 = 384
    bound2 = 1.0 / (latent2 ** 0.5)
    weight2 = jax.random.uniform(kw2, (output_dim, latent2),
                                 jnp.float32, -bound2, bound2)
    bias2 = jax.random.uniform(kb2, (output_dim,), jnp.float32, -bound2, bound2)
    x2 = jax.random.normal(kx2, (batch, latent2), jnp.float32)
    w2, b2, d_out2 = prepare_decoder_params(weight2, bias2,
                                            compute_dtype=jnp.float32)
    out2 = jax.jit(functools.partial(decoder_forward, out_dim=d_out2,
                                     max_working_set_bytes=1))(x2, w2, b2)
    jax.block_until_ready(out2)
    ref2 = jnp.tanh(x2 @ weight2.T + bias2)
    assert jnp.allclose(out2, ref2, atol=1e-4, rtol=1e-4)

    print("KERNEL_OK")
</pallas_src>

<mosaic_0001>
module attributes {stable_mosaic.version = 11 : i64} {
  func.func @_decoder_kernel_fused(%arg0: i32, %arg1: i32, %arg2: memref<8x128xbf16, #tpu.memory_space<vmem>>, %arg3: memref<128x128xbf16, #tpu.memory_space<vmem>>, %arg4: memref<1x128xf32, #tpu.memory_space<vmem>>, %arg5: memref<8x128xf32, #tpu.memory_space<vmem>>) attributes {dimension_semantics = [#tpu.dimension_semantics<parallel>, #tpu.dimension_semantics<parallel>], iteration_bounds = array<i64: 1, 1>, scalar_prefetch = 0 : i64, scratch_operands = 0 : i64, tpu.core_type = #tpu.core_type<tc>, window_params = [{transform_indices = @transform_0, window_bounds = array<i64: 8, 128>}, {transform_indices = @transform_1, window_bounds = array<i64: 128, 128>}, {transform_indices = @transform_2, window_bounds = array<i64: 1, 128>}, {transform_indices = @transform_3, window_bounds = array<i64: 8, 128>}]} {
    %c0 = arith.constant 0 : index
    %c0_0 = arith.constant 0 : index
    %0 = vector.load %arg2[%c0, %c0_0] : memref<8x128xbf16, #tpu.memory_space<vmem>>, vector<8x128xbf16>
    %c0_1 = arith.constant 0 : index
    %c0_2 = arith.constant 0 : index
    %1 = vector.load %arg3[%c0_1, %c0_2] : memref<128x128xbf16, #tpu.memory_space<vmem>>, vector<128x128xbf16>
    %cst = arith.constant dense<0.000000e+00> : vector<8x128xf32>
    %2 = tpu.matmul %0, %1, %cst {dimension_numbers = #tpu.dot_dimension_numbers<[1], [0], [0], [1], [0, 0, 1, 1], [], []>} : vector<8x128xbf16>, vector<128x128xbf16>, vector<8x128xf32> -> vector<8x128xf32>
    %c0_3 = arith.constant 0 : index
    %c0_4 = arith.constant 0 : index
    %3 = vector.load %arg4[%c0_3, %c0_4] : memref<1x128xf32, #tpu.memory_space<vmem>>, vector<1x128xf32>
    %4 = vector.broadcast %3 : vector<1x128xf32> to vector<8x128xf32>
    %5 = arith.addf %2, %4 : vector<8x128xf32>
    %6 = math.tanh %5 : vector<8x128xf32>
    %c0_5 = arith.constant 0 : index
    %c0_6 = arith.constant 0 : index
    %7 = vector.load %arg5[%c0_5, %c0_6] : memref<8x128xf32, #tpu.memory_space<vmem>>, vector<8x128xf32>
    tpu.vector_store %arg5[%c0_5, %c0_6], %6 {strides = array<i32>} : memref<8x128xf32, #tpu.memory_space<vmem>>, vector<8x128xf32>,
    return
  }
  func.func @transform_0(%arg0: i32, %arg1: i32) -> (i32, i32) {
    %c0_i32 = arith.constant 0 : i32
    %c0_i32_0 = arith.constant 0 : i32
    return %arg0, %c0_i32 : i32, i32
  }
  func.func @transform_1(%arg0: i32, %arg1: i32) -> (i32, i32) {
    %c0_i32 = arith.constant 0 : i32
    %c0_i32_0 = arith.constant 0 : i32
    return %c0_i32, %arg1 : i32, i32
  }
  func.func @transform_2(%arg0: i32, %arg1: i32) -> (i32, i32) {
    %c0_i32 = arith.constant 0 : i32
    %c0_i32_0 = arith.constant 0 : i32
    return %c0_i32, %arg1 : i32, i32
  }
  func.func @transform_3(%arg0: i32, %arg1: i32) -> (i32, i32) {
    %c0_i32 = arith.constant 0 : i32
    return %arg0, %arg1 : i32, i32
  }
}

</mosaic_0001>

<bundles_post_ra>
// kernel: decoder_forward.1
= control target key start
LH: loop header
LB: loop body
LE: loop exit
PB: predicated region body
PF: predicated region fallthrough
CT: control target
= control target key end

     0   :  { %8 = vsyncpa [#allocation3], 0  ;;  %s295_s0 = inlined_call_operand.vmem [shape: bf16[8,128], index: 0, kind: input, shape index: {}]   ;;  %s296_s1 = inlined_call_operand.hbm [shape: bf16[128,128], index: 1, kind: input, shape index: {}]   ;;  %s297_s2 = inlined_call_operand.vmem [shape: f32[1,128], index: 2, kind: input, shape index: {}]   ;;  %s298_s3 = inlined_call_operand.hbm [shape: f32[8,128], index: 3, kind: output, shape index: {}]  }
   0x1   :  { %9 = vsyncpa [#allocation4], 0  ;;  %s257_s12 = smov [#allocation2]  }
   0x2   :  { %s17_s13 = sshll.u32 %s257_s12, 4  ;;  %s18_s13 = int_to_ptr.vmem [resolvable:$true] %s17_s13 }
   0x3   :  { %s221_s14 = scalar_lea.vmem %s18_s13, 1024  ;;  %p226_p1 = scmp.lt.s32.totalorder %s18_s13, %s18_s13 }
   0x4   :  { %p222_p0 = scmp.ne.s32.totalorder %s18_s13, %s221_s14  ;;  %p227_p2 = scmp.lt.s32.totalorder %s221_s14, %s221_s14 }
   0x6   :  { %p228_p3 = por %p227_p2, %p226_p1 }
   0x8   :  { %p229_p4 = pnand %p228_p3, %p222_p0 }
   0xa   :  { %232 = shalt.err (!%p229_p4)
}
   0xb   :  { %s258_s15 = smov 64   ;;  %s259_s16 = smov 4  }
   0xc   :  { %23 = dma.hbm_to_vmem [thread:$0]  %s296_s1, 1024, %s18_s13, [#allocation3], %s258_s15, %s258_s15, %s259_s16  }
   0xd   :  { %253 = dma.done.wait [#allocation3], 1024  }
   0xe   :  { %254 = vsyncadd [#allocation3], 4294966272  ;;  %v260_v0 = vmov 0.0   ;;  %vm261_vm0 = vmmov 0   ;;  %v203_v1 = vld [vmem:[#allocation2 + $0x38] sm:$0xff]   ;;  %v204_v2 = vld [vmem:[#allocation2 + $0x30] sm:$0xff]  }
   0xf   :  { %177 = vmatprep.subr.bf16.mxu0 %v260_v0  ;;  %193 = vmatprep.mubr.msk.bf16.mxu0 %vm261_vm0, %v260_v0  ;;  %v205_v3 = vld [vmem:[#allocation2 + $0x28] sm:$0xff]   ;;  %v206_v4 = vld [vmem:[#allocation2 + $0x20] sm:$0xff]   ;;  %v207_v5 = vld [vmem:[#allocation2 + $0x18] sm:$0xff]   ;;  %s262_s22 = smov [#allocation5]  }
  0x10   :  { %178 = vmatpush3.bf16.msra.mxu0 %v203_v1  ;;  %v208_v6 = vld [vmem:[#allocation2 + $0x10] sm:$0xff]   ;;  %v209_v7 = vld [vmem:[#allocation2 + $0x8] sm:$0xff]   ;;  %v210_v8 = vld [vmem:[#allocation2] sm:$0xff]   ;;  %s150_s23 = sshll.u32 %s262_s22, 4  ;;  %s151_s23 = int_to_ptr.vmem [resolvable:$true] %s150_s23 }
  0x11   :  { %179 = vmatprep.subr.bf16.mxu0 %v260_v0  ;;  %v30_v9 = vld [vmem:[%s295_s0] sm:$0xf]  ;;  %s233_s24 = scalar_lea.vmem %s151_s23, 128  ;;  %p238_p6 = scmp.lt.s32.totalorder %s151_s23, %s151_s23 }
  0x12   :  { %v159_v10 = vld [vmem:[%s297_s2] ss:$0 sm:$0xff]  ;;  %p234_p5 = scmp.ne.s32.totalorder %s151_s23, %s233_s24  ;;  %p239_p7 = scmp.lt.s32.totalorder %s233_s24, %s233_s24 }
  0x14   :  { %180 = vmatpush3.bf16.msra.mxu0 %v204_v2  ;;  %p240_p8 = por %p239_p7, %p238_p6 }
  0x15   :  { %181 = vmatprep.subr.bf16.mxu0 %v260_v0 }
  0x16   :  { %p241_p9 = pnand %p240_p8, %p234_p5 }
  0x18   :  { %182 = vmatpush3.bf16.msra.mxu0 %v205_v3 }
  0x19   :  { %183 = vmatprep.subr.bf16.mxu0 %v260_v0 }
  0x1c   :  { %184 = vmatpush3.bf16.msra.mxu0 %v206_v4 }
  0x1d   :  { %185 = vmatprep.subr.bf16.mxu0 %v260_v0 }
  0x20   :  { %186 = vmatpush3.bf16.msra.mxu0 %v207_v5 }
  0x21   :  { %187 = vmatprep.subr.bf16.mxu0 %v260_v0 }
  0x24   :  { %188 = vmatpush3.bf16.msra.mxu0 %v208_v6 }
  0x25   :  { %189 = vmatprep.subr.bf16.mxu0 %v260_v0 }
  0x28   :  { %190 = vmatpush3.bf16.msra.mxu0 %v209_v7 }
  0x29   :  { %191 = vmatprep.subr.bf16.mxu0 %v260_v0 }
  0x2c   :  { %192 = vmatpush3.bf16.msra.mxu0 %v210_v8 }
  0x2f   :  { %194 = vmatmul.mubr.bf16.vlgmr.msra.gmra.mxu0 %v30_v9 }
  0xef   :  { %v136_v11 = vpop.f32.mrf.mxu0 }
  0xf0   :  { %v137_v12 = vadd.f32 %v159_v10, %v136_v11 }
  0xf1   :  { %v195_v13 = vpop.f32.mrf.mxu0 }
  0xf2   :  { %211 = vtanh.f32 %v137_v12 }
  0xf3   :  { %v139_v14 = vpop.f32.mrf.mxu0 }
  0xf5   :  { %v196_v15 = vpop.f32.mrf.mxu0 }
  0xff   :  { %v212_v16 = vpop.eup %211 }
 0x100   :  { %143 = vst [vmem:[#allocation5] sm:$0xff] %v212_v16 }
 0x101   :  { %244 = shalt.err (!%p241_p9)
}
 0x102   :  { %153 = dma.vmem_to_hbm [thread:$0]  %s151_s23, 128, %s298_s3, [#allocation4]  }
 0x103   :  { %255 = dma.done.wait [#allocation4], 128  }
 0x104   :  { %256 = vsyncadd [#allocation4], 4294967168 }
 0x105   :  { %157 = vsyncpa [#allocation3], 1 }
 0x106   :  { %158 = vsyncpa [#allocation4], 1 }

</bundles_post_ra>
